<compile_context>
chip_gen: v7x
topology: tpu7x:2x2x1
jax: 0.10.0
libtpu: 0.0.40
codegen_flags: <defaults>
</compile_context>

<pallas_src>
import functools

import numpy as np
import jax
import jax.numpy as jnp
from jax import lax
from jax.experimental import pallas as pl
from jax.experimental.pallas import tpu as pltpu

BN_EPS = 1e-5
LANE = 128
OC = 32           # conv output channels (group_blocks=1)
N_CLASSES = 3


# ---------------- one-time host-side folding / packing (numpy) ----------------

def _fold_conv_bn(W, b, g, be, mu, var):
    """Conv1d(k=2) + eval BN -> BN-scaled (O,C,2) weight and (O,) shift."""
    W, b, g, be, mu, var = (np.asarray(a, np.float32) for a in (W, b, g, be, mu, var))
    s = g / np.sqrt(var + BN_EPS)
    Wf = W * s[:, None, None]
    shift = (b - mu) * s + be
    return Wf.astype(np.float32), shift.astype(np.float32)


def _fold_bn_linear(g, bbn, m, v, W, blin):
    """eval BN followed by Linear -> fused (in,out) weight and (out,) bias."""
    g, bbn, m, v, W, blin = (np.asarray(a, np.float32) for a in (g, bbn, m, v, W, blin))
    s = g / np.sqrt(v + BN_EPS)
    A = s[:, None] * W.T                       # (in, out)
    c = (bbn - m * s) @ W.T + blin             # (out,)
    return A.astype(np.float32), c.astype(np.float32)


def _conv_as_lane_matrix(Wf, shift, c_in, l_in, in_lane):
    """One Conv1d(k=2,p=1)+BN layer as a (128,128) lane matrix + (1,128) shift.

    Kept output position t (t = 0..l_in-1, exactly the positions MaxPool(2)
    consumes) lands in lanes [t*OC, (t+1)*OC).  `in_lane(c, j)` gives the lane
    of input channel c at input position j in the incoming (Np,128) activation.
    Rows for unused lanes stay zero, so stale/garbage lanes are ignored.
    """
    big = np.zeros((LANE, LANE), np.float32)
    for c in range(c_in):
        for j in range(l_in):
            r = in_lane(c, j)
            big[r, j * OC:(j + 1) * OC] += Wf[:, c, 1]            # tap k=1 -> pos j
            if j + 1 < l_in:
                big[r, (j + 1) * OC:(j + 2) * OC] += Wf[:, c, 0]  # tap k=0 -> pos j+1
    sh = np.zeros((1, LANE), np.float32)
    for t in range(l_in):
        sh[0, t * OC:(t + 1) * OC] = shift
    return big, sh


def prepare_classifier_params(conv_layers, clf, c_in, L):
    """Fold eval-mode BN and pack all parameters into one (rows,128) f32 slab.

    Run ONCE per weight set; the returned device array is reused every call.
    Slab layout: n_mat weight matrices of 128 rows each, followed by n_mat
    shift rows (each 8-row aligned), n_mat = conv_blocks + 2.
    """
    n_conv = len(conv_layers)
    assert L == 2 ** n_conv, "flattened conv output must be (N, 32)"
    assert L * OC <= LANE and c_in * L <= LANE

    mats, shifts = [], []
    l_cur = L
    for li, (W, b, g, be, mu, var) in enumerate(conv_layers):
        Wf, sh = _fold_conv_bn(W, b, g, be, mu, var)
        if li == 0:
            # input is x.reshape(N, C*L): channel-major lanes (c*L + t)
            cin, in_lane = c_in, (lambda c, j, _L=L: c * _L + j)
        else:
            # input is the pooled activation: position j at lane block 2*j
            cin, in_lane = OC, (lambda c, j: 2 * j * OC + c)
        big, shrow = _conv_as_lane_matrix(Wf, sh, cin, l_cur, in_lane)
        mats.append(big)
        shifts.append(shrow)
        l_cur //= 2
    assert l_cur == 1

    A1, c1 = _fold_bn_linear(clf['g1'], clf['b1'], clf['m1'], clf['v1'],
                             clf['W1'], clf['bb1'])
    A2, c2 = _fold_bn_linear(clf['g2'], clf['b2'], clf['m2'], clf['v2'],
                             clf['W2'], clf['bb2'])
    for A, c in ((A1, c1), (A2, c2)):
        big = np.zeros((LANE, LANE), np.float32)
        big[:A.shape[0], :A.shape[1]] = A
        shrow = np.zeros((1, LANE), np.float32)
        shrow[0, :c.shape[0]] = c
        mats.append(big)
        shifts.append(shrow)

    n_mat = len(mats)
    slab = np.zeros((n_mat * LANE + n_mat * 8, LANE), np.float32)
    for i, m in enumerate(mats):
        slab[i * LANE:(i + 1) * LANE] = m
    for i, shrow in enumerate(shifts):
        slab[n_mat * LANE + i * 8] = shrow[0]
    return jnp.asarray(slab)


# ----------------------------------- kernel ------------------------------------

def _make_kernel(n_conv):
    n_mat = n_conv + 2
    s_base = n_mat * LANE

    def kernel(x_ref, p_ref, out_ref):
        def dense(h, i):
            w = p_ref[i * LANE:(i + 1) * LANE, :]                       # (128,128)
            sh = p_ref[s_base + i * 8: s_base + i * 8 + 1, :]           # (1,128)
            return jnp.dot(h, w, preferred_element_type=jnp.float32) + sh

        h = x_ref[...]                                                  # (Np, 128)
        for li in range(n_conv):
            # Conv1d(k=2,p=1) + folded BN + ReLU: one full-width MXU pass.
            y = jnp.maximum(dense(h, li), 0.0)
            # MaxPool1d(2): max of adjacent position lane-blocks via one XLU
            # lane rotate.  Stale result blocks are killed by the zero rows of
            # the next layer's weight matrix (no compaction / concatenation).
            h = jnp.maximum(y, pltpu.roll(y, LANE - OC, axis=1))
        # classifier: BN -> Linear -> ReLU -> BN -> Linear (BN folded on host)
        h = jnp.maximum(dense(h, n_conv), 0.0)
        logits = dense(h, n_conv + 1)
        # softmax(log_softmax(x)) == softmax(x): one numerically stable softmax
        # over the 3 active lanes; padding lanes are masked to -inf (exp -> 0).
        lane = lax.broadcasted_iota(jnp.int32, logits.shape, 1)
        z = jnp.where(lane < N_CLASSES, logits, -jnp.inf)
        z = z - jnp.max(z, axis=1, keepdims=True)
        e = jnp.exp(z)
        out_ref[...] = e / jnp.sum(e, axis=1, keepdims=True)

    return kernel


# ---------------------------------- wrapper ------------------------------------

@functools.partial(jax.jit, static_argnames=("n_conv",))
def classifier_forward_pallas(x_ncl, slab, *, n_conv):
    """x_ncl: (N, C_in, L) float32 (PyTorch Conv1d layout); slab from prepare_*."""
    N, C, L = x_ncl.shape
    assert L == 2 ** n_conv and L * OC <= LANE and C * L <= LANE
    Np = -(-N // 8) * 8
    # Channel-major flatten (no transpose: the layer-0 lane matrix is built for
    # the (c*L + t) lane order); pad batch to 8 rows and lanes to 128.
    xf = x_ncl.reshape(N, C * L).astype(jnp.float32)
    xf = jnp.pad(xf, ((0, Np - N), (0, LANE - C * L)))

    n_mat = n_conv + 2
    ce = pl.CostEstimate(
        flops=2 * Np * LANE * LANE * n_mat,
        transcendentals=Np * LANE,
        bytes_accessed=int(4 * (xf.size + slab.size + Np * LANE)))

    out = pl.pallas_call(
        _make_kernel(n_conv),
        out_shape=jax.ShapeDtypeStruct((Np, LANE), jnp.float32),
        in_specs=[pl.BlockSpec(memory_space=pltpu.MemorySpace.VMEM),
                  pl.BlockSpec(memory_space=pltpu.MemorySpace.VMEM)],
        out_specs=pl.BlockSpec(memory_space=pltpu.MemorySpace.VMEM),
        cost_estimate=ce,
    )(xf, slab)
    return out[:N, :N_CLASSES]


# ------------------------------ pure-JAX reference ------------------------------

def classifier_forward_ref(x_ncl, conv_layers, clf):
    """Pure-JAX reference mirroring the PyTorch forward (eval-mode BN)."""
    h = x_ncl.astype(jnp.float32)
    for (W, b, g, be, mu, var) in conv_layers:
        N, C, L = h.shape
        hp = jnp.pad(h, ((0, 0), (0, 0), (1, 1)))
        y = (jnp.einsum('nct,oc->not', hp[:, :, :L + 1], W[:, :, 0])
             + jnp.einsum('nct,oc->not', hp[:, :, 1:L + 2], W[:, :, 1])
             + b[None, :, None])
        y = ((y - mu[None, :, None]) * jax.lax.rsqrt(var[None, :, None] + BN_EPS)
             * g[None, :, None] + be[None, :, None])
        y = jnp.maximum(y, 0.0)
        Lp = y.shape[2] // 2
        h = y[:, :, :2 * Lp].reshape(N, y.shape[1], Lp, 2).max(axis=3)
    h = h.reshape(h.shape[0], -1)
    h = (h - clf['m1']) * jax.lax.rsqrt(clf['v1'] + BN_EPS) * clf['g1'] + clf['b1']
    h = h @ clf['W1'].T + clf['bb1']
    h = jnp.maximum(h, 0.0)
    h = (h - clf['m2']) * jax.lax.rsqrt(clf['v2'] + BN_EPS) * clf['g2'] + clf['b2']
    logits = h @ clf['W2'].T + clf['bb2']
    logp = jax.nn.log_softmax(logits, axis=1)
    return jax.nn.softmax(logp, axis=1)


def init_params(key, c_in, conv_blocks):
    conv_layers = []
    chans = [c_in] + [32] * conv_blocks
    for i in range(conv_blocks):
        key, k1, k2, k3, k4, k5, k6 = jax.random.split(key, 7)
        O, C = chans[i + 1], chans[i]
        conv_layers.append((
            0.1 * jax.random.normal(k1, (O, C, 2), jnp.float32),    # Conv1d weight
            0.1 * jax.random.normal(k2, (O,), jnp.float32),         # Conv1d bias
            1.0 + 0.1 * jax.random.normal(k3, (O,), jnp.float32),   # BN gamma
            0.1 * jax.random.normal(k4, (O,), jnp.float32),         # BN beta
            0.1 * jax.random.normal(k5, (O,), jnp.float32),         # BN running_mean
            1.0 + 0.1 * jax.random.uniform(k6, (O,), jnp.float32),  # BN running_var
        ))
    ks = jax.random.split(key, 12)
    clf = dict(
        g1=1.0 + 0.1 * jax.random.normal(ks[0], (32,), jnp.float32),
        b1=0.1 * jax.random.normal(ks[1], (32,), jnp.float32),
        m1=0.1 * jax.random.normal(ks[2], (32,), jnp.float32),
        v1=1.0 + 0.1 * jax.random.uniform(ks[3], (32,), jnp.float32),
        W1=0.1 * jax.random.normal(ks[4], (20, 32), jnp.float32),
        bb1=0.1 * jax.random.normal(ks[5], (20,), jnp.float32),
        g2=1.0 + 0.1 * jax.random.normal(ks[6], (20,), jnp.float32),
        b2=0.1 * jax.random.normal(ks[7], (20,), jnp.float32),
        m2=0.1 * jax.random.normal(ks[8], (20,), jnp.float32),
        v2=1.0 + 0.1 * jax.random.uniform(ks[9], (20,), jnp.float32),
        W2=0.1 * jax.random.normal(ks[10], (3, 20), jnp.float32),
        bb2=0.1 * jax.random.normal(ks[11], (3,), jnp.float32),
    )
    return conv_layers, clf


if __name__ == "__main__":
    N, C_IN, L = 8, 4, 4             # batch, in_channels_columns, sequence length
    CONV_BLOCKS = 2                  # conv_blocks=2, group_blocks=1

    root = jax.random.PRNGKey(0)
    kx, kp = jax.random.split(root)
    x = jax.random.normal(kx, (N, C_IN, L), jnp.float32)   # PyTorch (N, C, L) layout
    conv_layers, clf = init_params(kp, C_IN, CONV_BLOCKS)

    # One-time fold/pack (cached); the per-call path is just the jitted wrapper.
    slab = prepare_classifier_params(conv_layers, clf, C_IN, L)

    out = classifier_forward_pallas(x, slab, n_conv=CONV_BLOCKS)
    out = jax.block_until_ready(out)

    ref = classifier_forward_ref(x, conv_layers, clf)
    np.testing.assert_allclose(np.asarray(out), np.asarray(ref), rtol=2e-4, atol=5e-5)
    # rows are probabilities -> sum to 1
    np.testing.assert_allclose(np.asarray(out).sum(axis=1), np.ones(N), rtol=1e-5, atol=1e-5)

    print("KERNEL_OK")
</pallas_src>

<mosaic_0001>
module attributes {stable_mosaic.version = 11 : i64} {
  func.func @kernel(%arg0: memref<8x128xf32, #tpu.memory_space<vmem>>, %arg1: memref<544x128xf32, #tpu.memory_space<vmem>>, %arg2: memref<8x128xf32, #tpu.memory_space<vmem>>) attributes {dimension_semantics = [], scalar_prefetch = 0 : i64, scratch_operands = 0 : i64, tpu.core_type = #tpu.core_type<tc>} {
    %c0 = arith.constant 0 : index
    %c0_0 = arith.constant 0 : index
    %0 = vector.load %arg0[%c0, %c0_0] : memref<8x128xf32, #tpu.memory_space<vmem>>, vector<8x128xf32>
    %c0_1 = arith.constant 0 : index
    %c0_2 = arith.constant 0 : index
    %1 = vector.load %arg1[%c0_1, %c0_2] : memref<544x128xf32, #tpu.memory_space<vmem>>, vector<128x128xf32>
    %c512 = arith.constant 512 : index
    %c0_3 = arith.constant 0 : index
    %2 = vector.load %arg1[%c512, %c0_3] : memref<544x128xf32, #tpu.memory_space<vmem>>, vector<1x128xf32>
    %cst = arith.constant dense<0.000000e+00> : vector<8x128xf32>
    %3 = tpu.matmul %0, %1, %cst {dimension_numbers = #tpu.dot_dimension_numbers<[1], [0], [0], [1], [0, 0, 1, 1], [], []>} : vector<8x128xf32>, vector<128x128xf32>, vector<8x128xf32> -> vector<8x128xf32>
    %4 = vector.broadcast %2 : vector<1x128xf32> to vector<8x128xf32>
    %5 = arith.addf %3, %4 : vector<8x128xf32>
    %cst_4 = arith.constant 0.000000e+00 : f32
    %6 = vector.broadcast %cst_4 : f32 to vector<8x128xf32>
    %7 = arith.maximumf %5, %6 : vector<8x128xf32>
    %c96_i32 = arith.constant 96 : i32
    %8 = tpu.dynamic_rotate %7 by %c96_i32 dim 1 : vector<8x128xf32>, i32 -> vector<8x128xf32>
    %9 = arith.maximumf %7, %8 : vector<8x128xf32>
    %c128 = arith.constant 128 : index
    %c0_5 = arith.constant 0 : index
    %10 = vector.load %arg1[%c128, %c0_5] : memref<544x128xf32, #tpu.memory_space<vmem>>, vector<128x128xf32>
    %c520 = arith.constant 520 : index
    %c0_6 = arith.constant 0 : index
    %11 = vector.load %arg1[%c520, %c0_6] : memref<544x128xf32, #tpu.memory_space<vmem>>, vector<1x128xf32>
    %cst_7 = arith.constant dense<0.000000e+00> : vector<8x128xf32>
    %12 = tpu.matmul %9, %10, %cst_7 {dimension_numbers = #tpu.dot_dimension_numbers<[1], [0], [0], [1], [0, 0, 1, 1], [], []>} : vector<8x128xf32>, vector<128x128xf32>, vector<8x128xf32> -> vector<8x128xf32>
    %13 = vector.broadcast %11 : vector<1x128xf32> to vector<8x128xf32>
    %14 = arith.addf %12, %13 : vector<8x128xf32>
    %cst_8 = arith.constant 0.000000e+00 : f32
    %15 = vector.broadcast %cst_8 : f32 to vector<8x128xf32>
    %16 = arith.maximumf %14, %15 : vector<8x128xf32>
    %c96_i32_9 = arith.constant 96 : i32
    %17 = tpu.dynamic_rotate %16 by %c96_i32_9 dim 1 : vector<8x128xf32>, i32 -> vector<8x128xf32>
    %18 = arith.maximumf %16, %17 : vector<8x128xf32>
    %c256 = arith.constant 256 : index
    %c0_10 = arith.constant 0 : index
    %19 = vector.load %arg1[%c256, %c0_10] : memref<544x128xf32, #tpu.memory_space<vmem>>, vector<128x128xf32>
    %c528 = arith.constant 528 : index
    %c0_11 = arith.constant 0 : index
    %20 = vector.load %arg1[%c528, %c0_11] : memref<544x128xf32, #tpu.memory_space<vmem>>, vector<1x128xf32>
    %cst_12 = arith.constant dense<0.000000e+00> : vector<8x128xf32>
    %21 = tpu.matmul %18, %19, %cst_12 {dimension_numbers = #tpu.dot_dimension_numbers<[1], [0], [0], [1], [0, 0, 1, 1], [], []>} : vector<8x128xf32>, vector<128x128xf32>, vector<8x128xf32> -> vector<8x128xf32>
    %22 = vector.broadcast %20 : vector<1x128xf32> to vector<8x128xf32>
    %23 = arith.addf %21, %22 : vector<8x128xf32>
    %cst_13 = arith.constant 0.000000e+00 : f32
    %24 = vector.broadcast %cst_13 : f32 to vector<8x128xf32>
    %25 = arith.maximumf %23, %24 : vector<8x128xf32>
    %c384 = arith.constant 384 : index
    %c0_14 = arith.constant 0 : index
    %26 = vector.load %arg1[%c384, %c0_14] : memref<544x128xf32, #tpu.memory_space<vmem>>, vector<128x128xf32>
    %c536 = arith.constant 536 : index
    %c0_15 = arith.constant 0 : index
    %27 = vector.load %arg1[%c536, %c0_15] : memref<544x128xf32, #tpu.memory_space<vmem>>, vector<1x128xf32>
    %cst_16 = arith.constant dense<0.000000e+00> : vector<8x128xf32>
    %28 = tpu.matmul %25, %26, %cst_16 {dimension_numbers = #tpu.dot_dimension_numbers<[1], [0], [0], [1], [0, 0, 1, 1], [], []>} : vector<8x128xf32>, vector<128x128xf32>, vector<8x128xf32> -> vector<8x128xf32>
    %29 = vector.broadcast %27 : vector<1x128xf32> to vector<8x128xf32>
    %30 = arith.addf %28, %29 : vector<8x128xf32>
    %31 = tpu.iota {dimensions = array<i32: 1>} : vector<8x128xi32>
    %c3_i32 = arith.constant 3 : i32
    %32 = vector.broadcast %c3_i32 : i32 to vector<8x128xi32>
    %33 = arith.cmpi slt, %31, %32 : vector<8x128xi32>
    %cst_17 = arith.constant 0xFF800000 : f32
    %34 = vector.broadcast %cst_17 : f32 to vector<8x128xf32>
    %35 = arith.select %33, %30, %34 : vector<8x128xi1>, vector<8x128xf32>
    %cst_18 = arith.constant dense<0xFF800000> : vector<8xf32>
    %36 = vector.multi_reduction <maximumf>, %35, %cst_18 [1] : vector<8x128xf32> to vector<8xf32>
    %37 = vector.shape_cast %36 : vector<8xf32> to vector<8x1xf32>
    %38 = vector.broadcast %37 : vector<8x1xf32> to vector<8x128xf32>
    %39 = arith.subf %35, %38 : vector<8x128xf32>
    %40 = math.exp %39 : vector<8x128xf32>
    %cst_19 = arith.constant dense<0.000000e+00> : vector<8xf32>
    %41 = vector.multi_reduction <add>, %40, %cst_19 [1] : vector<8x128xf32> to vector<8xf32>
    %42 = vector.shape_cast %41 : vector<8xf32> to vector<8x1xf32>
    %43 = vector.broadcast %42 : vector<8x1xf32> to vector<8x128xf32>
    %44 = arith.divf %40, %43 : vector<8x128xf32>
    %c0_20 = arith.constant 0 : index
    %c0_21 = arith.constant 0 : index
    %45 = vector.load %arg2[%c0_20, %c0_21] : memref<8x128xf32, #tpu.memory_space<vmem>>, vector<8x128xf32>
    tpu.vector_store %arg2[%c0_20, %c0_21], %44 {strides = array<i32>} : memref<8x128xf32, #tpu.memory_space<vmem>>, vector<8x128xf32>,
    return
  }
}

</mosaic_0001>

<bundles_post_ra>
// kernel: classifier_forward_pallas.1
= control target key start
LH: loop header
LB: loop body
LE: loop exit
PB: predicated region body
PF: predicated region fallthrough
CT: control target
= control target key end

     0   :  { %7 = vsyncpa [#allocation3], 0  ;;  %s761_s9 = smov [#allocation2]   ;;  %s843_s0 = inlined_call_operand.vmem [shape: f32[8,128], index: 0, kind: input, shape index: {}]   ;;  %s844_s1 = inlined_call_operand.hbm [shape: f32[544,128], index: 1, kind: input, shape index: {}]   ;;  %s845_s2 = inlined_call_operand.vmem [shape: f32[8,128], index: 2, kind: output, shape index: {}]  }
   0x1   :  { %s15_s10 = sshll.u32 %s761_s9, 4  ;;  %s737_s13 = scalar_lea.hbm %s844_s1, 8704  ;;  %s16_s10 = int_to_ptr.vmem [resolvable:$true] %s15_s10 }
   0x2   :  { %p738_p0 = scmp.ne.s32.totalorder %s844_s1, %s737_s13  ;;  %p741_p1 = scmp.lt.u32.totalorder %s737_s13, %s844_s1 }
   0x4   :  { %p743_p2 = pnand %p741_p1, %p738_p0 }
   0x6   :  { %746 = shalt.err (!%p743_p2)
}
   0x7   :  { %s747_s18 = scalar_lea.vmem %s16_s10, 8704  ;;  %p752_p4 = scmp.lt.s32.totalorder %s16_s10, %s16_s10 }
   0x8   :  { %p748_p3 = scmp.ne.s32.totalorder %s16_s10, %s747_s18  ;;  %p753_p5 = scmp.lt.s32.totalorder %s747_s18, %s747_s18 }
   0xa   :  { %p754_p6 = por %p753_p5, %p752_p4 }
   0xc   :  { %p755_p7 = pnand %p754_p6, %p748_p3 }
   0xe   :  { %758 = shalt.err (!%p755_p7)
}
   0xf   :  { %s762_s19 = smov 128   ;;  %s763_s20 = smov 8  }
  0x10   :  { %21 = dma.hbm_to_vmem [thread:$0]  %s844_s1, 8704, %s16_s10, [#allocation3], %s762_s19, %s762_s19, %s763_s20  }
  0x11   :  { %759 = dma.done.wait [#allocation3], 8704  }
  0x12   :  { %760 = vsyncadd [#allocation3], 4294958592  ;;  %v764_v0 = vmov 0.0|0.0   ;;  %vm765_vm0 = vmmov 0   ;;  %v766_v1 = vmov 0.0   ;;  %v26_v2 = vld [vmem:[#allocation2] sm:$0xff] }
  0x13   :  { %630 = vmatprep.subr.bf16.mxu0 %v764_v0  ;;  %522 = vmatprep.mubr.msk.f32.mxu0 %vm765_vm0, %v766_v1  ;;  %v27_v3 = vld [vmem:[#allocation2 + $0x8] sm:$0xff]  ;;  %v28_v4 = vld [vmem:[#allocation2 + $0x10] sm:$0xff]  ;;  %v29_v6 = vld [vmem:[#allocation2 + $0x18] sm:$0xff] }
  0x14   :  { %654 = vmatprep.subr.bf16.mxu1 %v764_v0  ;;  %557 = vmatprep.mubr.msk.f32.mxu1 %vm765_vm0, %v766_v1  ;;  %v631_v5 = vpack.c.bf16 %v27_v3, %v26_v2  ;;  %v634_v7 = vpack.c.bf16 %v29_v6, %v28_v4  ;;  %v30_v8 = vld [vmem:[#allocation2 + $0x20] sm:$0xff]  ;;  %v31_v9 = vld [vmem:[#allocation2 + $0x28] sm:$0xff]  ;;  %v32_v11 = vld [vmem:[#allocation2 + $0x30] sm:$0xff] }
  0x15   :  { %v637_v10 = vpack.c.bf16 %v31_v9, %v30_v8  ;;  %v33_v12 = vld [vmem:[#allocation2 + $0x38] sm:$0xff]  ;;  %v34_v14 = vld [vmem:[#allocation2 + $0x40] sm:$0xff]  ;;  %v35_v15 = vld [vmem:[#allocation2 + $0x48] sm:$0xff] }
  0x16   :  { %632 = vmatpush3.bf16.msra.mxu0 %v631_v5  ;;  %v640_v13 = vpack.c.bf16 %v33_v12, %v32_v11  ;;  %v643_v16 = vpack.c.bf16 %v35_v15, %v34_v14  ;;  %v36_v17 = vld [vmem:[#allocation2 + $0x50] sm:$0xff]  ;;  %v37_v18 = vld [vmem:[#allocation2 + $0x58] sm:$0xff]  ;;  %v38_v20 = vld [vmem:[#allocation2 + $0x60] sm:$0xff] }
  0x17   :  { %633 = vmatprep.subr.bf16.mxu0 %v764_v0  ;;  %v646_v19 = vpack.c.bf16 %v37_v18, %v36_v17  ;;  %v39_v21 = vld [vmem:[#allocation2 + $0x68] sm:$0xff]  ;;  %v40_v23 = vld [vmem:[#allocation2 + $0x70] sm:$0xff]  ;;  %v41_v24 = vld [vmem:[#allocation2 + $0x78] sm:$0xff] }
  0x18   :  { %v649_v22 = vpack.c.bf16 %v39_v21, %v38_v20  ;;  %v652_v25 = vpack.c.bf16 %v41_v24, %v40_v23  ;;  %v25_v26 = vld [vmem:[%s843_s0] sm:$0xff]  ;;  %v122_v28 = vld [vmem:[#allocation2 + $0x88] sm:$0xff]  ;;  %v123_v29 = vld [vmem:[#allocation2 + $0x90] sm:$0xff]  ;;  %s767_s0 = smov 96  }
  0x19   :  { %v121_v27 = vld [vmem:[#allocation2 + $0x80] sm:$0xff]  ;;  %v124_v31 = vld [vmem:[#allocation2 + $0x98] sm:$0xff]  ;;  %v126_v34 = vld [vmem:[#allocation2 + $0xa8] sm:$0xff] }
  0x1a   :  { %635 = vmatpush3.bf16.msra.mxu0 %v634_v7  ;;  %v655_v30 = vpack.c.bf16 %v122_v28, %v121_v27  ;;  %v658_v32 = vpack.c.bf16 %v124_v31, %v123_v29  ;;  %v125_v33 = vld [vmem:[#allocation2 + $0xa0] sm:$0xff]  ;;  %v127_v36 = vld [vmem:[#allocation2 + $0xb0] sm:$0xff]  ;;  %v128_v37 = vld [vmem:[#allocation2 + $0xb8] sm:$0xff] }
  0x1b   :  { %636 = vmatprep.subr.bf16.mxu0 %v764_v0  ;;  %v661_v35 = vpack.c.bf16 %v126_v34, %v125_v33  ;;  %v664_v38 = vpack.c.bf16 %v128_v37, %v127_v36  ;;  %v129_v39 = vld [vmem:[#allocation2 + $0xc0] sm:$0xff]  ;;  %v130_v40 = vld [vmem:[#allocation2 + $0xc8] sm:$0xff]  ;;  %v131_v42 = vld [vmem:[#allocation2 + $0xd0] sm:$0xff] }
  0x1c   :  { %656 = vmatpush3.bf16.msra.mxu1 %v655_v30  ;;  %v667_v41 = vpack.c.bf16 %v130_v40, %v129_v39  ;;  %v132_v43 = vld [vmem:[#allocation2 + $0xd8] sm:$0xff]  ;;  %v133_v45 = vld [vmem:[#allocation2 + $0xe0] sm:$0xff]  ;;  %v134_v46 = vld [vmem:[#allocation2 + $0xe8] sm:$0xff] }
  0x1d   :  { %657 = vmatprep.subr.bf16.mxu1 %v764_v0  ;;  %v670_v44 = vpack.c.bf16 %v132_v43, %v131_v42  ;;  %v673_v47 = vpack.c.bf16 %v134_v46, %v133_v45  ;;  %v135_v48 = vld [vmem:[#allocation2 + $0xf0] sm:$0xff]  ;;  %v136_v49 = vld [vmem:[#allocation2 + $0xf8] sm:$0xff]  ;;  %v418_v51 = vld [vmem:[#allocation2 + $0x200] ss:$0 sm:$0xff] }
  0x1e   :  { %638 = vmatpush3.bf16.msra.mxu0 %v637_v10  ;;  %v676_v50 = vpack.c.bf16 %v136_v49, %v135_v48  ;;  %v216_v58 = vld [vmem:[#allocation2 + $0x100] sm:$0xff]  ;;  %v217_v59 = vld [vmem:[#allocation2 + $0x108] sm:$0xff]  ;;  %v218_v60 = vld [vmem:[#allocation2 + $0x110] sm:$0xff] }
  0x1f   :  { %639 = vmatprep.subr.bf16.mxu0 %v764_v0  ;;  %v679_v61 = vpack.c.bf16 %v217_v59, %v216_v58  ;;  %v219_v62 = vld [vmem:[#allocation2 + $0x118] sm:$0xff]  ;;  %v220_v2 = vld [vmem:[#allocation2 + $0x120] sm:$0xff]  ;;  %v221_v3 = vld [vmem:[#allocation2 + $0x128] sm:$0xff] }
  0x20   :  { %659 = vmatpush3.bf16.msra.mxu1 %v658_v32  ;;  %v682_v63 = vpack.c.bf16 %v219_v62, %v218_v60  ;;  %v685_v4 = vpack.c.bf16 %v221_v3, %v220_v2  ;;  %v222_v5 = vld [vmem:[#allocation2 + $0x130] sm:$0xff]  ;;  %v223_v6 = vld [vmem:[#allocation2 + $0x138] sm:$0xff]  ;;  %v225_v8 = vld [vmem:[#allocation2 + $0x148] sm:$0xff] }
  0x21   :  { %660 = vmatprep.subr.bf16.mxu1 %v764_v0  ;;  %v688_v7 = vpack.c.bf16 %v223_v6, %v222_v5  ;;  %v226_v10 = vld [vmem:[#allocation2 + $0x150] sm:$0xff]  ;;  %v227_v11 = vld [vmem:[#allocation2 + $0x158] sm:$0xff]  ;;  %v229_v14 = vld [vmem:[#allocation2 + $0x168] sm:$0xff] }
  0x22   :  { %641 = vmatpush3.bf16.msra.mxu0 %v640_v13  ;;  %v694_v12 = vpack.c.bf16 %v227_v11, %v226_v10  ;;  %v228_v13 = vld [vmem:[#allocation2 + $0x160] sm:$0xff]  ;;  %v231_v17 = vld [vmem:[#allocation2 + $0x178] sm:$0xff]  ;;  %v309_v20 = vld [vmem:[#allocation2 + $0x188] sm:$0xff] }
  0x23   :  { %642 = vmatprep.subr.bf16.mxu0 %v764_v0  ;;  %v697_v15 = vpack.c.bf16 %v229_v14, %v228_v13  ;;  %v310_v21 = vld [vmem:[#allocation2 + $0x190] sm:$0xff]  ;;  %v311_v23 = vld [vmem:[#allocation2 + $0x198] sm:$0xff]  ;;  %v313_v27 = vld [vmem:[#allocation2 + $0x1a8] sm:$0xff] }
  0x24   :  { %662 = vmatpush3.bf16.msra.mxu1 %v661_v35  ;;  %v706_v24 = vpack.c.bf16 %v311_v23, %v310_v21  ;;  %v314_v32 = vld [vmem:[#allocation2 + $0x1b0] sm:$0xff]  ;;  %v315_v33 = vld [vmem:[#allocation2 + $0x1b8] sm:$0xff]  ;;  %v316_v36 = vld [vmem:[#allocation2 + $0x1c0] sm:$0xff] }
  0x25   :  { %663 = vmatprep.subr.bf16.mxu1 %v764_v0  ;;  %v712_v35 = vpack.c.bf16 %v315_v33, %v314_v32  ;;  %v317_v37 = vld [vmem:[#allocation2 + $0x1c8] sm:$0xff]  ;;  %v318_v39 = vld [vmem:[#allocation2 + $0x1d0] sm:$0xff]  ;;  %v319_v40 = vld [vmem:[#allocation2 + $0x1d8] sm:$0xff] }
  0x26   :  { %644 = vmatpush3.bf16.msra.mxu0 %v643_v16  ;;  %v230_v16 = vld [vmem:[#allocation2 + $0x170] sm:$0xff]  ;;  %v320_v42 = vld [vmem:[#allocation2 + $0x1e0] sm:$0xff]  ;;  %v321_v43 = vld [vmem:[#allocation2 + $0x1e8] sm:$0xff] }
  0x27   :  { %645 = vmatprep.subr.bf16.mxu0 %v764_v0  ;;  %v700_v18 = vpack.c.bf16 %v231_v17, %v230_v16  ;;  %v323_v48 = vld [vmem:[#allocation2 + $0x1f8] sm:$0xff] }
  0x28   :  { %665 = vmatpush3.bf16.msra.mxu1 %v664_v38  ;;  %v715_v38 = vpack.c.bf16 %v317_v37, %v316_v36 }
  0x29   :  { %666 = vmatprep.subr.bf16.mxu1 %v764_v0 }
  0x2a   :  { %647 = vmatpush3.bf16.msra.mxu0 %v646_v19  ;;  %v308_v19 = vld [vmem:[#allocation2 + $0x180] sm:$0xff] }
  0x2b   :  { %648 = vmatprep.subr.bf16.mxu0 %v764_v0 }
  0x2c   :  { %668 = vmatpush3.bf16.msra.mxu1 %v667_v41  ;;  %v718_v41 = vpack.c.bf16 %v319_v40, %v318_v39 }
  0x2d   :  { %669 = vmatprep.subr.bf16.mxu1 %v764_v0 }
  0x2e   :  { %650 = vmatpush3.bf16.msra.mxu0 %v649_v22  ;;  %v703_v22 = vpack.c.bf16 %v309_v20, %v308_v19 }
  0x2f   :  { %651 = vmatprep.subr.bf16.mxu0 %v764_v0 }
  0x30   :  { %671 = vmatpush3.bf16.msra.mxu1 %v670_v44  ;;  %v721_v44 = vpack.c.bf16 %v321_v43, %v320_v42 }
  0x31   :  { %672 = vmatprep.subr.bf16.mxu1 %v764_v0 }
  0x32   :  { %653 = vmatpush3.bf16.msra.mxu0 %v652_v25  ;;  %v419_v25 = vld [vmem:[#allocation2 + $0x208] ss:$0 sm:$0xff] }
  0x33   :  { %678 = vmatprep.subr.bf16.mxu0 %v764_v0 }
  0x34   :  { %674 = vmatpush3.bf16.msra.mxu1 %v673_v47  ;;  %v322_v47 = vld [vmem:[#allocation2 + $0x1f0] sm:$0xff] }
  0x35   :  { %523 = vmatmul.mubr.f32.vlgmr.msra.gmra.mrb[0].mxu0 %v25_v26  ;;  %675 = vmatprep.subr.bf16.mxu1 %v764_v0  ;;  %v312_v26 = vld [vmem:[#allocation2 + $0x1a0] sm:$0xff]  ;;  %v724_v49 = vpack.c.bf16 %v323_v48, %v322_v47 }
  0x36   :  { %592 = vmatprep.mubr.msk.f32.mxu0 %vm765_vm0, %v766_v1  ;;  %680 = vmatpush3.bf16.msra.mxu0 %v679_v61  ;;  %v709_v31 = vpack.c.bf16 %v313_v27, %v312_v26 }
  0x37   :  { %681 = vmatprep.subr.bf16.mxu0 %v764_v0 }
  0x38   :  { %677 = vmatpush3.bf16.msra.mxu1 %v676_v50  ;;  %v420_v50 = vld [vmem:[#allocation2 + $0x210] ss:$0 sm:$0xff] }
  0x39   :  { %702 = vmatprep.subr.bf16.mxu1 %v764_v0 }
  0x3a   :  { %683 = vmatpush3.bf16.msra.mxu0 %v682_v63 }
  0x3b   :  { %684 = vmatprep.subr.bf16.mxu0 %v764_v0 }
  0x3e   :  { %686 = vmatpush3.bf16.msra.mxu0 %v685_v4 }
  0x3f   :  { %687 = vmatprep.subr.bf16.mxu0 %v764_v0 }
  0x42   :  { %689 = vmatpush3.bf16.msra.mxu0 %v688_v7 }
  0x43   :  { %690 = vmatprep.subr.bf16.mxu0 %v764_v0 }
 0x108   :  { %v113_v52 = vpop.f32.mrb[0].mxu0 }
 0x109   :  { %v114_v53 = vadd.f32 %v418_v51, %v113_v52  ;;  %v524_v54 = vpop.f32.mrb[1].mxu0 }
 0x10b   :  { %v117_v55 = vmax.f32 %v114_v53, 0.0 }
 0x10d   :  { %118 = vrot.lane.b32.xlu0 %v117_v55, %s767_s0 }
 0x17f   :  { %v119_v56 = vpop.permute.xlu0 %118 }
 0x180   :  { %v120_v57 = vmax.f32 %v117_v55, %v119_v56  ;;  %v399_v55 = vlaneseq }
 0x182   :  { %558 = vmatmul.mubr.f32.vlgmr.msra.gmra.mrb[0].mxu1 %v120_v57  ;;  %v400_v56 = vand.u32 127, %v399_v55  ;;  %v421_v57 = vld [vmem:[#allocation2 + $0x218] ss:$0 sm:$0xff] }
 0x183   :  { %627 = vmatprep.mubr.msk.f32.mxu1 %vm765_vm0, %v766_v1  ;;  %v224_v1 = vld [vmem:[#allocation2 + $0x140] sm:$0xff]  ;;  %704 = vmatpush3.bf16.msra.mxu1 %v703_v22 }
 0x184   :  { %v691_v9 = vpack.c.bf16 %v225_v8, %v224_v1  ;;  %705 = vmatprep.subr.bf16.mxu1 %v764_v0  ;;  %vm401_vm1 = vcmp.lt.s32.totalorder %v400_v56, 3 }
 0x186   :  { %692 = vmatpush3.bf16.msra.mxu0 %v691_v9 }
 0x187   :  { %693 = vmatprep.subr.bf16.mxu0 %v764_v0  ;;  %707 = vmatpush3.bf16.msra.mxu1 %v706_v24 }
 0x188   :  { %708 = vmatprep.subr.bf16.mxu1 %v764_v0 }
 0x18a   :  { %695 = vmatpush3.bf16.msra.mxu0 %v694_v12 }
 0x18b   :  { %696 = vmatprep.subr.bf16.mxu0 %v764_v0  ;;  %710 = vmatpush3.bf16.msra.mxu1 %v709_v31 }
 0x18c   :  { %711 = vmatprep.subr.bf16.mxu1 %v764_v0 }
 0x18e   :  { %698 = vmatpush3.bf16.msra.mxu0 %v697_v15 }
 0x18f   :  { %699 = vmatprep.subr.bf16.mxu0 %v764_v0  ;;  %713 = vmatpush3.bf16.msra.mxu1 %v712_v35 }
 0x190   :  { %714 = vmatprep.subr.bf16.mxu1 %v764_v0 }
 0x192   :  { %701 = vmatpush3.bf16.msra.mxu0 %v700_v18 }
 0x193   :  { %716 = vmatpush3.bf16.msra.mxu1 %v715_v38 }
 0x194   :  { %717 = vmatprep.subr.bf16.mxu1 %v764_v0 }
 0x197   :  { %719 = vmatpush3.bf16.msra.mxu1 %v718_v41 }
 0x198   :  { %720 = vmatprep.subr.bf16.mxu1 %v764_v0 }
 0x19b   :  { %722 = vmatpush3.bf16.msra.mxu1 %v721_v44 }
 0x19c   :  { %723 = vmatprep.subr.bf16.mxu1 %v764_v0 }
 0x19f   :  { %725 = vmatpush3.bf16.msra.mxu1 %v724_v49 }
 0x255   :  { %v208_v28 = vpop.f32.mrb[0].mxu1 }
 0x256   :  { %v209_v29 = vadd.f32 %v419_v25, %v208_v28  ;;  %v559_v30 = vpop.f32.mrb[1].mxu1 }
 0x258   :  { %v212_v34 = vmax.f32 %v209_v29, 0.0 }
 0x25a   :  { %213 = vrot.lane.b32.xlu0 %v212_v34, %s767_s0 }
 0x2cc   :  { %v214_v45 = vpop.permute.xlu0 %213 }
 0x2cd   :  { %v215_v46 = vmax.f32 %v212_v34, %v214_v45 }
 0x2cf   :  { %593 = vmatmul.mubr.f32.vlgmr.msra.gmra.mrb[2].mxu0 %v215_v46 }
 0x3a2   :  { %v303_v51 = vpop.f32.mrb[2].mxu0 }
 0x3a3   :  { %v304_v52 = vadd.f32 %v420_v50, %v303_v51  ;;  %v594_v53 = vpop.f32.mrb[3].mxu0 }
 0x3a5   :  { %v307_v54 = vmax.f32 %v304_v52, 0.0 }
 0x3a7   :  { %628 = vmatmul.mubr.f32.vlgmr.msra.gmra.mrb[2].mxu1 %v307_v54 }
 0x47a   :  { %v395_v58 = vpop.f32.mrb[2].mxu1 }
 0x47b   :  { %v396_v59 = vadd.f32 %v421_v57, %v395_v58  ;;  %v629_v0 = vpop.f32.mrb[3].mxu1 }
 0x47d   :  { %v402_v60 = vsel %vm401_vm1, %v396_v59, -inf }
 0x47e   :  { %403 = vmax.xlane.f32.xlu1 %v402_v60 }
 0x50b   :  { %v404_v61 = vpop.xlane.xlu1 %403 }
 0x50c   :  { %v405_v62 = vsub.f32 %v402_v60, %v404_v61 }
 0x50e   :  { %v406_v63 = vmul.f32 1.442695, %v405_v62 }
 0x510   :  { %733 = vpow2.f32 %v406_v63 }
 0x51a   :  { %v734_v2 = vpop.eup %733 }
 0x51b   :  { %408 = vadd.xlane.f32.xlu1 %v734_v2 }
 0x5a8   :  { %v409_v3 = vpop.xlane.xlu1 %408 }
 0x5a9   :  { %735 = vrcp.f32 %v409_v3 }
 0x5b3   :  { %v736_v4 = vpop.eup %735 }
 0x5b4   :  { %v411_v5 = vmul.f32 %v736_v4, %v734_v2 }
 0x5b6   :  { %412 = vst [vmem:[%s845_s2] sm:$0xff] %v411_v5 }
 0x5b7   :  { %417 = vsyncpa [#allocation3], 1 }

</bundles_post_ra>
